<compile_context>
chip_gen: v7x
topology: tpu7x:2x2x1
jax: 0.10.0
libtpu: 0.0.40
codegen_flags: <defaults>
</compile_context>

<pallas_src>
import jax
import jax.numpy as jnp
from jax.experimental import pallas as pl
from jax.experimental.pallas import tpu as pltpu

LANE = 128  # TPU lane width: tiny head output dims are padded to this


def make_detr_kernel(C, HW, E, NQ, kb, has_pos, has_qpos):
    """Fused DETR forward kernel, specialized on which positional encodings
    exist (absent ones cost zero DMA and zero VPU adds)."""
    scale = 1.0 / float(E) ** 0.5
    bf16 = jnp.bfloat16

    def kernel(*refs):
        it = iter(refs)
        x_ref = next(it)                               # (1, 1, C, E)    bf16
        q_ref = next(it)                               # (1, NQ, E)      f32
        pos_ref = next(it) if has_pos else None        # (1, HW, E)      bf16 (row-permuted)
        qpos_ref = next(it) if has_qpos else None      # (1, NQ, E)      f32
        wconv_ref = next(it)                           # (E, C)          bf16
        wh1_ref = next(it)                             # (E, LANE + E)   bf16  [wc_pad | w1]
        bh1_ref = next(it)                             # (1, LANE + E)   f32   [bc_pad | b1]
        w2_ref = next(it)                              # (E, E)          bf16
        b2_ref = next(it)                              # (1, E)          f32
        w3_ref = next(it)                              # (E, LANE)       bf16  (cols >= 4 zero)
        b3_ref = next(it)                              # (1, LANE)       f32
        out_ref = next(it)                             # (1, NQ, 2*LANE) f32
        src_ref = next(it)                             # (HW, E)         bf16 scratch

        t = pl.program_id(1)

        # 1x1 conv, one E-wide column block of the (E, HW) conv output per grid
        # step; those E rows are exactly rows [t*E, (t+1)*E) of the (permuted)
        # .view(b, h*w, c) of the conv activation.  Written straight to scratch
        # (no concatenate, no list of live blocks).
        blk = jnp.dot(wconv_ref[...], x_ref[0, 0],
                      preferred_element_type=jnp.float32)          # (E, E) f32
        row0 = pl.multiple_of(t * E, E)
        src_ref[pl.ds(row0, E), :] = blk.astype(bf16)

        @pl.when(t == kb - 1)
        def _finalize():
            src = src_ref[...]                                      # (HW, E) bf16
            k = (src + pos_ref[0]) if has_pos else src
            qb = (q_ref[0] + qpos_ref[0]) if has_qpos else q_ref[0]

            # TODO(synk): `transformer` is an injected nn.Module in the original
            # DETR; a single-head cross-attention (queries attend to the conv
            # feature map) is the deterministic stand-in producing (NQ, E).
            q_s = (qb * scale).astype(bf16)          # fold 1/sqrt(E) into q
            s = jnp.einsum('qd,kd->qk', q_s, k,
                           preferred_element_type=jnp.float32)      # (NQ, HW)
            s = s - jnp.max(s, axis=-1, keepdims=True)
            p = jnp.exp(s)
            p = p * pl.reciprocal(jnp.sum(p, axis=-1, keepdims=True), approx=True)
            o = jnp.dot(p.astype(bf16), src,
                        preferred_element_type=jnp.float32)         # (NQ, E)
            ob = o.astype(bf16)

            # Heads sharing `o` as LHS fused into one matmul:
            # columns [0, LANE) = class head, [LANE, LANE+E) = box-FFN layer 0.
            fused = jnp.dot(ob, wh1_ref[...],
                            preferred_element_type=jnp.float32) + bh1_ref[...]
            labels = fused[:, :LANE]
            h = jnp.maximum(fused[:, LANE:], 0.0)
            h = jnp.maximum(
                jnp.dot(h.astype(bf16), w2_ref[...],
                        preferred_element_type=jnp.float32) + b2_ref[...], 0.0)
            bx = jnp.dot(h.astype(bf16), w3_ref[...],
                         preferred_element_type=jnp.float32) + b3_ref[...]
            boxes = jax.nn.sigmoid(bx)

            # Lane-dense slab: labels in lanes [0,128), boxes in [128,256).
            out_ref[0, :, 0:LANE] = labels
            out_ref[0, :, LANE:2 * LANE] = boxes

    return kernel


def detr_forward(x, object_queries, params, pos=None, query_pos=None):
    B, C, H, W = x.shape
    E = params['conv_w'].shape[0]
    HW = H * W
    NQ = object_queries.shape[1]
    ncls1 = params['wc'].shape[1]

    # TODO(synk): `backbone` is an injected nn.Module in the original DETR;
    # identity stand-in, so `x` already carries `in_features` channels.
    feature = x

    assert HW % E == 0, (
        "fused kernel builds the .view(b, h*w, c) rows from E-wide column "
        "blocks of the conv output and needs h*w to be a multiple of embed_dim")
    kb = HW // E

    f32, bf16 = jnp.float32, jnp.bfloat16

    # NCHW -> (B, kb, C, E): one aligned, contiguous (C, E) column block of the
    # feature map per inner grid step (bf16 halves the HBM->VMEM bytes).
    x4 = feature.reshape(B, C, kb, E).transpose(0, 2, 1, 3).astype(bf16)

    # Weights as bf16 MXU operands (f32 accumulation in-kernel); tiny head
    # output dims zero-padded to a full 128-lane tile for unmasked stores.
    wconv = params['conv_w'].astype(bf16)
    wc_pad = jnp.zeros((E, LANE), bf16).at[:, :ncls1].set(params['wc'].astype(bf16))
    bc_pad = jnp.zeros((1, LANE), f32).at[:, :ncls1].set(
        params['bc'].reshape(1, ncls1).astype(f32))
    wh1 = jnp.concatenate([wc_pad, params['w1'].astype(bf16)], axis=1)      # (E, LANE+E)
    bh1 = jnp.concatenate([bc_pad, params['b1'].reshape(1, E).astype(f32)], axis=1)
    w2 = params['w2'].astype(bf16)
    b2 = params['b2'].reshape(1, E).astype(f32)
    w3 = jnp.zeros((E, LANE), bf16).at[:, :4].set(params['w3'].astype(bf16))
    b3 = jnp.zeros((1, LANE), f32).at[:, :4].set(params['b3'].reshape(1, 4).astype(f32))

    has_pos = pos is not None
    has_qpos = query_pos is not None

    inputs = [x4, object_queries.astype(f32)]
    in_specs = [
        pl.BlockSpec((1, 1, C, E), lambda b, t: (b, t, 0, 0)),
        pl.BlockSpec((1, NQ, E), lambda b, t: (b, 0, 0)),
    ]
    if has_pos:
        # Row-permute pos to match the kernel's block-grouped src rows
        # (kernel row t*E + r  <->  view row r*kb + t); the attention stand-in
        # is exactly invariant under this simultaneous permutation of (src, pos).
        posP = (pos.astype(bf16)
                .reshape(B, E, kb, E).transpose(0, 2, 1, 3).reshape(B, HW, E))
        inputs.append(posP)
        in_specs.append(pl.BlockSpec((1, HW, E), lambda b, t: (b, 0, 0)))
    if has_qpos:
        inputs.append(query_pos.astype(f32))
        in_specs.append(pl.BlockSpec((1, NQ, E), lambda b, t: (b, 0, 0)))

    weights = [wconv, wh1, bh1, w2, b2, w3, b3]
    in_specs += [pl.BlockSpec(w.shape, lambda b, t: (0, 0)) for w in weights]

    kernel = make_detr_kernel(C, HW, E, NQ, kb, has_pos, has_qpos)

    flops = 2 * B * (E * C * HW                    # 1x1 conv
                     + 2 * NQ * HW * E             # QK^T + PV
                     + NQ * E * (LANE + E)         # fused class head + FFN layer 0
                     + NQ * E * E                  # FFN layer 1
                     + NQ * E * LANE)              # FFN layer 2 (padded)
    transcendentals = B * NQ * (HW + LANE)         # softmax exp + sigmoid
    bytes_accessed = int(sum(a.size * a.dtype.itemsize for a in inputs + weights)
                         + B * NQ * 2 * LANE * 4)

    slab = pl.pallas_call(
        kernel,
        out_shape=jax.ShapeDtypeStruct((B, NQ, 2 * LANE), jnp.float32),
        grid=(B, kb),
        in_specs=in_specs,
        out_specs=pl.BlockSpec((1, NQ, 2 * LANE), lambda b, t: (b, 0, 0)),
        scratch_shapes=[pltpu.VMEM((HW, E), bf16)],
        compiler_params=pltpu.CompilerParams(
            dimension_semantics=("parallel", "arbitrary"),
            vmem_limit_bytes=32 * 1024 * 1024),
        cost_estimate=pl.CostEstimate(flops=flops,
                                      transcendentals=transcendentals,
                                      bytes_accessed=bytes_accessed),
    )(*inputs, *weights)

    return {'labels': slab[:, :, :ncls1], 'bboxes': slab[:, :, LANE:LANE + 4]}


def _reference_forward(x, oq, params, pos, qpos):
    """Pure f32 JAX reference following the PyTorch forward (view semantics)."""
    B, C, H, W = x.shape
    E = params['conv_w'].shape[0]
    conv = jnp.einsum('ec,bcp->bep', params['conv_w'], x.reshape(B, C, H * W))
    src = conv.reshape(B, H * W, E)                  # .contiguous().view(b, h*w, c)
    k = src + (pos if pos is not None else 0.0)
    q = oq + (qpos if qpos is not None else 0.0)
    s = jnp.einsum('bqd,bkd->bqk', q, k) / jnp.sqrt(jnp.float32(E))
    p = jax.nn.softmax(s, axis=-1)
    o = jnp.einsum('bqk,bkd->bqd', p, src)
    labels = o @ params['wc'] + params['bc']
    h = jax.nn.relu(o @ params['w1'] + params['b1'])
    h = jax.nn.relu(h @ params['w2'] + params['b2'])
    boxes = jax.nn.sigmoid(h @ params['w3'] + params['b3'])
    return labels, boxes


if __name__ == "__main__":
    key = jax.random.PRNGKey(0)
    # small shapes consistent with the module's forward (H*W multiple of E)
    B, C, H, W = 2, 8, 8, 8          # batch, in_features, spatial
    E, NQ, NCLS = 32, 16, 7          # embed_dim, num_queries, num_classes

    ks = jax.random.split(key, 13)

    def u(k, shape, scale=0.1):
        return jax.random.uniform(k, shape, jnp.float32, -scale, scale)

    # Linear weights stored transposed as (in, out) so the kernel computes x @ W + b.
    params = dict(
        conv_w=u(ks[0], (E, C)),                              # Conv2d(in_features, E, 1, bias=False)
        wc=u(ks[1], (E, NCLS + 1)), bc=u(ks[2], (NCLS + 1,)), # Linear(E, num_classes+1)
        w1=u(ks[3], (E, E)), b1=u(ks[4], (E,)),               # BoxFFN layer 0
        w2=u(ks[5], (E, E)), b2=u(ks[6], (E,)),               # BoxFFN layer 1
        w3=u(ks[7], (E, 4)), b3=u(ks[8], (4,)),               # BoxFFN layer 2
    )

    x = u(ks[9], (B, C, H, W), 1.0)
    object_queries = u(ks[10], (B, NQ, E), 1.0)
    pos = u(ks[11], (B, H * W, E), 0.1)
    query_pos = u(ks[12], (B, NQ, E), 0.1)

    out = jax.jit(detr_forward)(x, object_queries, params, pos, query_pos)
    jax.block_until_ready(out)

    assert out['labels'].shape == (B, NQ, NCLS + 1)
    assert out['bboxes'].shape == (B, NQ, 4)

    # Validate against the f32 JAX reference (bf16 MXU operands + approx
    # reciprocal introduce ~1e-2 level differences).
    ref_labels, ref_boxes = _reference_forward(x, object_queries, params, pos, query_pos)
    assert float(jnp.max(jnp.abs(out['labels'] - ref_labels))) < 5e-2
    assert float(jnp.max(jnp.abs(out['bboxes'] - ref_boxes))) < 5e-2

    print("KERNEL_OK")
</pallas_src>

<mosaic_0001>
module attributes {stable_mosaic.version = 11 : i64} {
  func.func @kernel(%arg0: i32, %arg1: i32, %arg2: memref<1x1x8x32xbf16, #tpu.memory_space<vmem>>, %arg3: memref<1x16x32xf32, #tpu.memory_space<vmem>>, %arg4: memref<1x64x32xbf16, #tpu.memory_space<vmem>>, %arg5: memref<1x16x32xf32, #tpu.memory_space<vmem>>, %arg6: memref<32x8xbf16, #tpu.memory_space<vmem>>, %arg7: memref<32x160xbf16, #tpu.memory_space<vmem>>, %arg8: memref<1x160xf32, #tpu.memory_space<vmem>>, %arg9: memref<32x32xbf16, #tpu.memory_space<vmem>>, %arg10: memref<1x32xf32, #tpu.memory_space<vmem>>, %arg11: memref<32x128xbf16, #tpu.memory_space<vmem>>, %arg12: memref<1x128xf32, #tpu.memory_space<vmem>>, %arg13: memref<1x16x256xf32, #tpu.memory_space<vmem>>, %arg14: memref<64x32xbf16, #tpu.memory_space<vmem>>) attributes {dimension_semantics = [#tpu.dimension_semantics<parallel>, #tpu.dimension_semantics<arbitrary>], iteration_bounds = array<i64: 2, 2>, scalar_prefetch = 0 : i64, scratch_operands = 1 : i64, tpu.core_type = #tpu.core_type<tc>, window_params = [{transform_indices = @transform_0, window_bounds = array<i64: 1, 1, 8, 32>}, {transform_indices = @transform_1, window_bounds = array<i64: 1, 16, 32>}, {transform_indices = @transform_2, window_bounds = array<i64: 1, 64, 32>}, {transform_indices = @transform_3, window_bounds = array<i64: 1, 16, 32>}, {pipeline_mode = #tpu.pipeline_mode<synchronous>, transform_indices = @transform_4, window_bounds = array<i64: 32, 8>}, {pipeline_mode = #tpu.pipeline_mode<synchronous>, transform_indices = @transform_5, window_bounds = array<i64: 32, 160>}, {pipeline_mode = #tpu.pipeline_mode<synchronous>, transform_indices = @transform_6, window_bounds = array<i64: 1, 160>}, {pipeline_mode = #tpu.pipeline_mode<synchronous>, transform_indices = @transform_7, window_bounds = array<i64: 32, 32>}, {pipeline_mode = #tpu.pipeline_mode<synchronous>, transform_indices = @transform_8, window_bounds = array<i64: 1, 32>}, {pipeline_mode = #tpu.pipeline_mode<synchronous>, transform_indices = @transform_9, window_bounds = array<i64: 32, 128>}, {pipeline_mode = #tpu.pipeline_mode<synchronous>, transform_indices = @transform_10, window_bounds = array<i64: 1, 128>}, {transform_indices = @transform_11, window_bounds = array<i64: 1, 16, 256>}]} {
    %c0 = arith.constant 0 : index
    %c0_0 = arith.constant 0 : index
    %0 = vector.load %arg6[%c0, %c0_0] : memref<32x8xbf16, #tpu.memory_space<vmem>>, vector<32x8xbf16>
    %c0_1 = arith.constant 0 : index
    %c0_2 = arith.constant 0 : index
    %c0_3 = arith.constant 0 : index
    %c0_4 = arith.constant 0 : index
    %1 = vector.load %arg2[%c0_1, %c0_2, %c0_3, %c0_4] : memref<1x1x8x32xbf16, #tpu.memory_space<vmem>>, vector<1x1x8x32xbf16>
    %2 = vector.shape_cast %1 : vector<1x1x8x32xbf16> to vector<8x32xbf16>
    %cst = arith.constant dense<0.000000e+00> : vector<32x32xf32>
    %3 = tpu.matmul %0, %2, %cst {dimension_numbers = #tpu.dot_dimension_numbers<[1], [0], [0], [1], [0, 0, 1, 1], [], []>} : vector<32x8xbf16>, vector<8x32xbf16>, vector<32x32xf32> -> vector<32x32xf32>
    %c32_i32 = arith.constant 32 : i32
    %4 = arith.muli %arg1, %c32_i32 : i32
    %5 = tpu.assume_multiple %4, 32 : i32
    %6 = arith.truncf %3 : vector<32x32xf32> to vector<32x32xbf16>
    %7 = arith.index_cast %5 : i32 to index
    %c0_5 = arith.constant 0 : index
    %8 = vector.load %arg14[%7, %c0_5] : memref<64x32xbf16, #tpu.memory_space<vmem>>, vector<32x32xbf16>
    tpu.vector_store %arg14[%7, %c0_5], %6 {strides = array<i32>} : memref<64x32xbf16, #tpu.memory_space<vmem>>, vector<32x32xbf16>,
    %c1_i32 = arith.constant 1 : i32
    %9 = arith.cmpi eq, %arg1, %c1_i32 : i32
    %10 = arith.extui %9 : i1 to i32
    %c0_i32 = arith.constant 0 : i32
    %11 = arith.cmpi ne, %10, %c0_i32 : i32
    scf.if %11 {
      %c0_6 = arith.constant 0 : index
      %c0_7 = arith.constant 0 : index
      %12 = vector.load %arg14[%c0_6, %c0_7] : memref<64x32xbf16, #tpu.memory_space<vmem>>, vector<64x32xbf16>
      %c0_8 = arith.constant 0 : index
      %c0_9 = arith.constant 0 : index
      %c0_10 = arith.constant 0 : index
      %13 = vector.load %arg4[%c0_8, %c0_9, %c0_10] : memref<1x64x32xbf16, #tpu.memory_space<vmem>>, vector<1x64x32xbf16>
      %14 = vector.shape_cast %13 : vector<1x64x32xbf16> to vector<64x32xbf16>
      %15 = arith.addf %12, %14 : vector<64x32xbf16>
      %c0_11 = arith.constant 0 : index
      %c0_12 = arith.constant 0 : index
      %c0_13 = arith.constant 0 : index
      %16 = vector.load %arg3[%c0_11, %c0_12, %c0_13] : memref<1x16x32xf32, #tpu.memory_space<vmem>>, vector<1x16x32xf32>
      %17 = vector.shape_cast %16 : vector<1x16x32xf32> to vector<16x32xf32>
      %c0_14 = arith.constant 0 : index
      %c0_15 = arith.constant 0 : index
      %c0_16 = arith.constant 0 : index
      %18 = vector.load %arg5[%c0_14, %c0_15, %c0_16] : memref<1x16x32xf32, #tpu.memory_space<vmem>>, vector<1x16x32xf32>
      %19 = vector.shape_cast %18 : vector<1x16x32xf32> to vector<16x32xf32>
      %20 = arith.addf %17, %19 : vector<16x32xf32>
      %cst_17 = arith.constant 0.176776692 : f32
      %21 = vector.broadcast %cst_17 : f32 to vector<16x32xf32>
      %22 = arith.mulf %20, %21 : vector<16x32xf32>
      %23 = arith.truncf %22 : vector<16x32xf32> to vector<16x32xbf16>
      "tpu.trace_start"() <{level = 10 : i32, message = "qd,kd->qk"}> : () -> ()
      %cst_18 = arith.constant dense<0.000000e+00> : vector<16x64xf32>
      %24 = tpu.matmul %23, %15, %cst_18 {dimension_numbers = #tpu.dot_dimension_numbers<[1], [1], [0], [0], [0, 0, 1, 0], [], []>} : vector<16x32xbf16>, vector<64x32xbf16>, vector<16x64xf32> -> vector<16x64xf32>
      "tpu.trace_stop"() : () -> ()
      %cst_19 = arith.constant dense<0xFF800000> : vector<16xf32>
      %25 = vector.multi_reduction <maximumf>, %24, %cst_19 [1] : vector<16x64xf32> to vector<16xf32>
      %26 = vector.shape_cast %25 : vector<16xf32> to vector<16x1xf32>
      %27 = vector.broadcast %26 : vector<16x1xf32> to vector<16x64xf32>
      %28 = arith.subf %24, %27 : vector<16x64xf32>
      %29 = math.exp %28 : vector<16x64xf32>
      %cst_20 = arith.constant dense<0.000000e+00> : vector<16xf32>
      %30 = vector.multi_reduction <add>, %29, %cst_20 [1] : vector<16x64xf32> to vector<16xf32>
      %31 = vector.shape_cast %30 : vector<16xf32> to vector<16x1xf32>
      %32 = tpu.reciprocal %31 {approx = true} : vector<16x1xf32> -> vector<16x1xf32>
      %33 = vector.broadcast %32 : vector<16x1xf32> to vector<16x64xf32>
      %34 = arith.mulf %29, %33 : vector<16x64xf32>
      %35 = arith.truncf %34 : vector<16x64xf32> to vector<16x64xbf16>
      %cst_21 = arith.constant dense<0.000000e+00> : vector<16x32xf32>
      %36 = tpu.matmul %35, %12, %cst_21 {dimension_numbers = #tpu.dot_dimension_numbers<[1], [0], [0], [1], [0, 0, 1, 1], [], []>} : vector<16x64xbf16>, vector<64x32xbf16>, vector<16x32xf32> -> vector<16x32xf32>
      %37 = arith.truncf %36 : vector<16x32xf32> to vector<16x32xbf16>
      %c0_22 = arith.constant 0 : index
      %c0_23 = arith.constant 0 : index
      %38 = vector.load %arg7[%c0_22, %c0_23] : memref<32x160xbf16, #tpu.memory_space<vmem>>, vector<32x160xbf16>
      %cst_24 = arith.constant dense<0.000000e+00> : vector<16x160xf32>
      %39 = tpu.matmul %37, %38, %cst_24 {dimension_numbers = #tpu.dot_dimension_numbers<[1], [0], [0], [1], [0, 0, 1, 1], [], []>} : vector<16x32xbf16>, vector<32x160xbf16>, vector<16x160xf32> -> vector<16x160xf32>
      %c0_25 = arith.constant 0 : index
      %c0_26 = arith.constant 0 : index
      %40 = vector.load %arg8[%c0_25, %c0_26] : memref<1x160xf32, #tpu.memory_space<vmem>>, vector<1x160xf32>
      %41 = vector.broadcast %40 : vector<1x160xf32> to vector<16x160xf32>
      %42 = arith.addf %39, %41 : vector<16x160xf32>
      %43 = vector.extract_strided_slice %42 {offsets = [0, 0], sizes = [16, 128], strides = [1, 1]} : vector<16x160xf32> to vector<16x128xf32>
      %44 = vector.extract_strided_slice %42 {offsets = [0, 128], sizes = [16, 32], strides = [1, 1]} : vector<16x160xf32> to vector<16x32xf32>
      %cst_27 = arith.constant 0.000000e+00 : f32
      %45 = vector.broadcast %cst_27 : f32 to vector<16x32xf32>
      %46 = arith.maximumf %44, %45 : vector<16x32xf32>
      %47 = arith.truncf %46 : vector<16x32xf32> to vector<16x32xbf16>
      %c0_28 = arith.constant 0 : index
      %c0_29 = arith.constant 0 : index
      %48 = vector.load %arg9[%c0_28, %c0_29] : memref<32x32xbf16, #tpu.memory_space<vmem>>, vector<32x32xbf16>
      %cst_30 = arith.constant dense<0.000000e+00> : vector<16x32xf32>
      %49 = tpu.matmul %47, %48, %cst_30 {dimension_numbers = #tpu.dot_dimension_numbers<[1], [0], [0], [1], [0, 0, 1, 1], [], []>} : vector<16x32xbf16>, vector<32x32xbf16>, vector<16x32xf32> -> vector<16x32xf32>
      %c0_31 = arith.constant 0 : index
      %c0_32 = arith.constant 0 : index
      %50 = vector.load %arg10[%c0_31, %c0_32] : memref<1x32xf32, #tpu.memory_space<vmem>>, vector<1x32xf32>
      %51 = vector.broadcast %50 : vector<1x32xf32> to vector<16x32xf32>
      %52 = arith.addf %49, %51 : vector<16x32xf32>
      %cst_33 = arith.constant 0.000000e+00 : f32
      %53 = vector.broadcast %cst_33 : f32 to vector<16x32xf32>
      %54 = arith.maximumf %52, %53 : vector<16x32xf32>
      %55 = arith.truncf %54 : vector<16x32xf32> to vector<16x32xbf16>
      %c0_34 = arith.constant 0 : index
      %c0_35 = arith.constant 0 : index
      %56 = vector.load %arg11[%c0_34, %c0_35] : memref<32x128xbf16, #tpu.memory_space<vmem>>, vector<32x128xbf16>
      %cst_36 = arith.constant dense<0.000000e+00> : vector<16x128xf32>
      %57 = tpu.matmul %55, %56, %cst_36 {dimension_numbers = #tpu.dot_dimension_numbers<[1], [0], [0], [1], [0, 0, 1, 1], [], []>} : vector<16x32xbf16>, vector<32x128xbf16>, vector<16x128xf32> -> vector<16x128xf32>
      %c0_37 = arith.constant 0 : index
      %c0_38 = arith.constant 0 : index
      %58 = vector.load %arg12[%c0_37, %c0_38] : memref<1x128xf32, #tpu.memory_space<vmem>>, vector<1x128xf32>
      %59 = vector.broadcast %58 : vector<1x128xf32> to vector<16x128xf32>
      %60 = arith.addf %57, %59 : vector<16x128xf32>
      %61 = arith.negf %60 : vector<16x128xf32>
      %62 = math.exp %61 : vector<16x128xf32>
      %cst_39 = arith.constant 1.000000e+00 : f32
      %63 = vector.broadcast %cst_39 : f32 to vector<16x128xf32>
      %64 = arith.addf %63, %62 : vector<16x128xf32>
      %65 = arith.divf %63, %64 : vector<16x128xf32>
      %c0_40 = arith.constant 0 : index
      %c0_41 = arith.constant 0 : index
      %c0_42 = arith.constant 0 : index
      %66 = vector.load %arg13[%c0_40, %c0_41, %c0_42] : memref<1x16x256xf32, #tpu.memory_space<vmem>>, vector<1x16x128xf32>
      %67 = vector.shape_cast %66 : vector<1x16x128xf32> to vector<16x128xf32>
      %68 = vector.shape_cast %43 : vector<16x128xf32> to vector<1x16x128xf32>
      tpu.vector_store %arg13[%c0_40, %c0_41, %c0_42], %68 {strides = array<i32>} : memref<1x16x256xf32, #tpu.memory_space<vmem>>, vector<1x16x128xf32>,
      %c0_43 = arith.constant 0 : index
      %c0_44 = arith.constant 0 : index
      %c128 = arith.constant 128 : index
      %69 = vector.load %arg13[%c0_43, %c0_44, %c128] : memref<1x16x256xf32, #tpu.memory_space<vmem>>, vector<1x16x128xf32>
      %70 = vector.shape_cast %69 : vector<1x16x128xf32> to vector<16x128xf32>
      %71 = vector.shape_cast %65 : vector<16x128xf32> to vector<1x16x128xf32>
      tpu.vector_store %arg13[%c0_43, %c0_44, %c128], %71 {strides = array<i32>} : memref<1x16x256xf32, #tpu.memory_space<vmem>>, vector<1x16x128xf32>,
    } else {
    }
    return
  }
  func.func @transform_0(%arg0: i32, %arg1: i32) -> (i32, i32, i32, i32) {
    %c0_i32 = arith.constant 0 : i32
    %c0_i32_0 = arith.constant 0 : i32
    %c0_i32_1 = arith.constant 0 : i32
    return %arg0, %arg1, %c0_i32, %c0_i32_0 : i32, i32, i32, i32
  }
  func.func @transform_1(%arg0: i32, %arg1: i32) -> (i32, i32, i32) {
    %c0_i32 = arith.constant 0 : i32
    %c0_i32_0 = arith.constant 0 : i32
    %c0_i32_1 = arith.constant 0 : i32
    return %arg0, %c0_i32, %c0_i32_0 : i32, i32, i32
  }
  func.func @transform_2(%arg0: i32, %arg1: i32) -> (i32, i32, i32) {
    %c0_i32 = arith.constant 0 : i32
    %c0_i32_0 = arith.constant 0 : i32
    %c0_i32_1 = arith.constant 0 : i32
    return %arg0, %c0_i32, %c0_i32_0 : i32, i32, i32
  }
  func.func @transform_3(%arg0: i32, %arg1: i32) -> (i32, i32, i32) {
    %c0_i32 = arith.constant 0 : i32
    %c0_i32_0 = arith.constant 0 : i32
    %c0_i32_1 = arith.constant 0 : i32
    return %arg0, %c0_i32, %c0_i32_0 : i32, i32, i32
  }
  func.func @transform_4(%arg0: i32, %arg1: i32) -> (i32, i32) {
    %c0_i32 = arith.constant 0 : i32
    %c0_i32_0 = arith.constant 0 : i32
    %c0_i32_1 = arith.constant 0 : i32
    return %c0_i32, %c0_i32_0 : i32, i32
  }
  func.func @transform_5(%arg0: i32, %arg1: i32) -> (i32, i32) {
    %c0_i32 = arith.constant 0 : i32
    %c0_i32_0 = arith.constant 0 : i32
    %c0_i32_1 = arith.constant 0 : i32
    return %c0_i32, %c0_i32_0 : i32, i32
  }
  func.func @transform_6(%arg0: i32, %arg1: i32) -> (i32, i32) {
    %c0_i32 = arith.constant 0 : i32
    %c0_i32_0 = arith.constant 0 : i32
    %c0_i32_1 = arith.constant 0 : i32
    return %c0_i32, %c0_i32_0 : i32, i32
  }
  func.func @transform_7(%arg0: i32, %arg1: i32) -> (i32, i32) {
    %c0_i32 = arith.constant 0 : i32
    %c0_i32_0 = arith.constant 0 : i32
    %c0_i32_1 = arith.constant 0 : i32
    return %c0_i32, %c0_i32_0 : i32, i32
  }
  func.func @transform_8(%arg0: i32, %arg1: i32) -> (i32, i32) {
    %c0_i32 = arith.constant 0 : i32
    %c0_i32_0 = arith.constant 0 : i32
    %c0_i32_1 = arith.constant 0 : i32
    return %c0_i32, %c0_i32_0 : i32, i32
  }
  func.func @transform_9(%arg0: i32, %arg1: i32) -> (i32, i32) {
    %c0_i32 = arith.constant 0 : i32
    %c0_i32_0 = arith.constant 0 : i32
    %c0_i32_1 = arith.constant 0 : i32
    return %c0_i32, %c0_i32_0 : i32, i32
  }
  func.func @transform_10(%arg0: i32, %arg1: i32) -> (i32, i32) {
    %c0_i32 = arith.constant 0 : i32
    %c0_i32_0 = arith.constant 0 : i32
    %c0_i32_1 = arith.constant 0 : i32
    return %c0_i32, %c0_i32_0 : i32, i32
  }
  func.func @transform_11(%arg0: i32, %arg1: i32) -> (i32, i32, i32) {
    %c0_i32 = arith.constant 0 : i32
    %c0_i32_0 = arith.constant 0 : i32
    %c0_i32_1 = arith.constant 0 : i32
    return %arg0, %c0_i32, %c0_i32_0 : i32, i32, i32
  }
}

</mosaic_0001>

<bundles_post_ra>
// kernel: detr_forward.1
= control target key start
LH: loop header
LB: loop body
LE: loop exit
PB: predicated region body
PF: predicated region fallthrough
CT: control target
= control target key end

     0   :  { %s1375_s17 = smov 0   ;;  %s1377_s18 = smov 0   ;;  %s1537_s0 = inlined_call_operand.vmem [shape: bf16[2,2,8,32], index: 0, kind: input, shape index: {}]   ;;  %s1538_s1 = inlined_call_operand.vmem [shape: f32[2,16,32], index: 1, kind: input, shape index: {}]   ;;  %s1539_s2 = inlined_call_operand.vmem [shape: bf16[2,64,32], index: 2, kind: input, shape index: {}]   ;;  %s1540_s3 = inlined_call_operand.vmem [shape: f32[2,16,32], index: 3, kind: input, shape index: {}]   ;;  %s1541_s4 = inlined_call_operand.vmem [shape: bf16[32,8], index: 4, kind: input, shape index: {}]   ;;  %s1542_s5 = inlined_call_operand.vmem [shape: bf16[32,160], index: 5, kind: input, shape index: {}]   ;;  %s1543_s6 = inlined_call_operand.vmem [shape: f32[1,160], index: 6, kind: input, shape index: {}]   ;;  %s1544_s7 = inlined_call_operand.vmem [shape: bf16[32,32], index: 7, kind: input, shape index: {}]   ;;  %s1545_s8 = inlined_call_operand.vmem [shape: f32[1,32], index: 8, kind: input, shape index: {}]   ;;  %s1546_s9 = inlined_call_operand.vmem [shape: bf16[32,128], index: 9, kind: input, shape index: {}]   ;;  %s1547_s10 = inlined_call_operand.vmem [shape: f32[1,128], index: 10, kind: input, shape index: {}]   ;;  %s1548_s11 = inlined_call_operand.vmem [shape: f32[2,16,256], index: 11, kind: output, shape index: {}]  }
   0x1   :  { %s1379_s19 = smov 0   ;;  %s1381_s20 = smov 0  }
   0x2   :  { %s1383_s21 = smov 0  }
   0x3 LB: > { %1552 = sst [smem:[#allocation3_spill]] %s1302_s19  ;;  %s30_s22 = sadd.s32 1, %s1302_s19  ;;  %s1310_s21 = sphi %s1383_s21, %s21_s21   ;;  %s1306_s20 = sphi %s1381_s20, %s1561_s20   ;;  %s1302_s19 = sphi %s1379_s19, %s1560_s19   ;;  %s1298_s18 = sphi %s1377_s18, %s1559_s18   ;;  %s1294_s17 = sphi %s1375_s17, %s1558_s17  }
   0x4   : > { %1553 = sst [smem:[#allocation4_spill]] %s1306_s20  ;;  %s33_s23 = sadd.s32 1, %s1306_s20 }
   0x5   : > { %1554 = sst [smem:[#allocation5_spill]] %s1310_s21  ;;  %p31_p0 = scmp.ge.s32.totalorder %s30_s22, 2 }
   0x6   : > { %p1086_p1 = scmp.ge.s32.totalorder %s1310_s21, 1  ;;  %p384_p2 = scmp.lt.s32.totalorder %s1310_s21, 5 }
   0x7   : > { %s1563_s22 = smov (%p31_p0, %s30_s22), 0  ;;  %s1565_s23 = smov (!%p31_p0, %s33_s23), %s1306_s20 }
   0x8   : > { %1555 = sst [smem:[#allocation6_spill]] %s1563_s22  ;;  %p385_p3 = pnand %p1086_p1, %p384_p2 }
   0x9   : > { %p35_p4 = scmp.ge.s32.totalorder %s1565_s23, 2  ;;  %p442_p5 = scmp.lt.s32.totalorder (!%p385_p3), %s1298_s18, 1  ;;  %v1240_v0 = vld [vmem:[%s1541_s4] sm:$0xff] (!%p385_p3)   ;;  %vm486_vm0 = vcmask (!%p385_p3), 64512   ;;  %vm493_vm1 = vcmask (!%p385_p3), 1043456   ;;  %v1241_v3 = vld [vmem:[%s1541_s4 + $0x8] sm:$0xff] (!%p385_p3)  }
   0xa   : > { %388 = sbr.rel (%p385_p3) target bundleno = 1719 (0x6b7), region = 64  ;;  %p444_p6 = scmp.lt.s32.totalorder (!%p385_p3), %s1294_s17, 1  ;;  %1152 = vmatprep.mubr.msk.bf16.mxu0 (!%p385_p3), %vm486_vm0, %v1240_v0  ;;  %vm553_vm2 = vcmask (!%p385_p3), 261120  }
   0xb   : > { %s1567_s23 = smov (%p35_p4, %s1565_s23), 0  ;;  %s1101_s22 = sshll.u32 (!%p385_p3), %s1294_s17, 5 }
   0xc   : > { %1556 = sst [smem:[#allocation7_spill]] %s1567_s23  ;;  %s549_s23 = sshra.s32 (!%p385_p3), %s1101_s22, 4 }
   0xd   : > { %s1102_s19 = sshll.u32 (!%p385_p3), %s549_s23, 3  ;;  %p1103_p7 = scmp.ne.s32.totalorder (!%p385_p3), %s1294_s17, 1 }
   0xe   : > { %s552_s21 = scalar_lea.vmem (!%p385_p3), [#allocation2], %s1102_s19 }
  0x11   : > { %s1569_s18 = smov (!%p442_p5, %s1298_s18), 1  ;;  %v1312_v11 = vmov (!%p1103_p7), 0.0   ;;  %vm1313_vm3 = vmmov (!%p1103_p7), 0   ;;  %vm665_vm4 = vcmask (!%p1103_p7), 523264   ;;  %v1248_v52 = vld [vmem:[%s1542_s5 + $0x4] ss:$8 sps:$4 sm:$0xff] (!%p1103_p7)  }
  0x12   : > { %s445_s26 = scalar_select %p444_p6, %s1294_s17, 1 }
  0x13   : > { %s1087_s27 = sshll.u32 %s1569_s18, 1  ;;  %s1127_s28 = sshll.u32 %s1569_s18, 4  ;;  %1168 = vmatprep.subr.bf16.mxu1 (!%p1103_p7), %v1312_v11  ;;  %1176 = vmatprep.mubr.msk.bf16.mxu1 (!%p1103_p7), %vm1313_vm3, %v1312_v11  ;;  %v1246_v59 = vld [vmem:[%s1542_s5] ss:$8 sps:$4 sm:$0xff] (!%p1103_p7)   ;;  %v1251_v61 = vld [vmem:[%s1542_s5 + $0x14] ss:$8 sps:$4 sm:$0xff] (!%p1103_p7)  }
  0x14   : > { %s447_s29 = sadd.s32 %s1087_s27, %s445_s26  ;;  %s1416_s13 = scalar_lea.vmem %s1538_s1, %s1127_s28  ;;  %v1249_v62 = vld [vmem:[%s1542_s5 + $0x10] ss:$8 sps:$4 sm:$0xff] (!%p1103_p7)   ;;  %v1314_v63 = vmov (!%p1103_p7), 0  }
  0x15   : > { %s1088_s14 = sshll.u32 %s447_s29, 2  ;;  %s1128_s15 = sshll.u32 %s1569_s18, 5  ;;  %v600_v25 = vld [vmem:[%s1416_s13] sm:$0xff] (!%p1103_p7)  ;;  %v601_v26 = vld [vmem:[%s1416_s13 + $0x8] sm:$0xff] (!%p1103_p7) }
  0x16   : > { %s449_s25 = scalar_lea.vmem %s1537_s0, %s1088_s14  ;;  %s1424_s20 = scalar_lea.vmem %s1539_s2, %s1128_s15 }
  0x17   : > { %s1429_s26 = scalar_lea.vmem %s1540_s3, %s1127_s28  ;;  %s1434_s29 = scalar_lea.vmem %s1548_s11, %s1128_s15  ;;  %v475_v1 = vld [vmem:[%s449_s25] sm:$0xf]  ;;  %v1243_v14 = vld [vmem:[%s1424_s20 + $0x8] sm:$0xff] (!%p1103_p7)   ;;  %v1244_v20 = vld [vmem:[%s1424_s20 + $0x10] sm:$0xff] (!%p1103_p7)  }
  0x18   : > { %1196 = vmatprep.subr.msk.bf16.mxu0 %vm493_vm1, %v475_v1  ;;  %v495_v2 = vsel %vm493_vm1, %v475_v1, 0  ;;  %v1242_v12 = vld [vmem:[%s1424_s20] sm:$0xff] (!%p1103_p7)   ;;  %v1245_v24 = vld [vmem:[%s1424_s20 + $0x18] sm:$0xff] (!%p1103_p7)   ;;  %v603_v28 = vld [vmem:[%s1429_s26 + $0x8] sm:$0xff] (!%p1103_p7) }
  0x19   : > { %1151 = vmatpush3.bf16.msra.mxu0 %v495_v2  ;;  %v602_v27 = vld [vmem:[%s1429_s26] sm:$0xff] (!%p1103_p7)  ;;  %v605_v31 = vadd.f32 (!%p1103_p7), %v603_v28, %v601_v26 }
  0x1a   : > { %1156 = vmatprep.subr.bf16.mxu0 (!%p1103_p7), %v1312_v11  ;;  %v604_v30 = vadd.f32 (!%p1103_p7), %v602_v27, %v600_v25  ;;  %v1254_v26 = vld [vmem:[%s1546_s9] sm:$0xff] (!%p1103_p7)   ;;  %v1255_v27 = vld [vmem:[%s1546_s9 + $0x8] sm:$0xff] (!%p1103_p7)  }
  0x1b   : > { %v607_v34 = vmul.f32 (!%p1103_p7), 0.17677669, %v605_v31  ;;  %v1115_v28 = vld [vmem:[%s1545_s8] ss:$0 sm:$0xff] (!%p1103_p7) }
  0x1c   : > { %1153 = vmatmul.mubr.msk.bf16.vlgmr.msra.gmra.mrb[0].mxu0 %vm486_vm0, %v1241_v3  ;;  %v606_v33 = vmul.f32 (!%p1103_p7), 0.17677669, %v604_v30 }
  0x1d   : > { %1164 = vmatprep.mubr.msk.bf16.mxu0 (!%p1103_p7), %vm1313_vm3, %v1312_v11 }
  0x1e   : > { %v608_v35 = vpack.c.bf16 (!%p1103_p7), %v607_v34, %v606_v33 }
  0xef   : > { %v1154_v4 = vpop.f32.mrb[0].mxu0  ;;  %559 = sbr.rel (%p1103_p7) target bundleno = 1719 (0x6b7), region = 68 }
  0xf0   : > { %v531_v5 = vpop.f32.mrb[1].mxu0 }
  0xf1   : > { %v1155_v6 = vpop.f32.mrb[2].mxu0 }
  0xf2   : > { %v548_v7 = vpack.c.bf16 %v1155_v6, %v1154_v4  ;;  %v534_v8 = vpop.f32.mrb[3].mxu0  ;;  %v1253_v6 = vld [vmem:[%s1544_s7 + $0x8] sm:$0xff] (!%p1103_p7)  }
  0xf3   : > { %v547_v9 = vpack.c.bf16 %v534_v8, %v531_v5  ;;  %v1252_v5 = vld [vmem:[%s1544_s7] sm:$0xff] (!%p1103_p7)  }
  0xf4   : > { %555 = vst.msk [vmem:[%s552_s21 + $0x8] sm:$0xff] %vm553_vm2, %v548_v7  ;;  %v740_v7 = vlaneseq (!%p1103_p7) }
  0xf5   : > { %554 = vst.msk [vmem:[%s552_s21] sm:$0xff] %vm553_vm2, %v547_v9 }
  0xf6   : > { %v741_v8 = vshrl.u32 %v740_v7, 7 }
  0xf8   : > { %v742_v9 = vsub.s32 0, %v741_v8 }
  0xfc   : > { %v560_v10 = vld [vmem:[#allocation2] sm:$0xff]  ;;  %v561_v15 = vld [vmem:[#allocation2 + $0x8] sm:$0xff]  ;;  %v562_v18 = vld [vmem:[#allocation2 + $0x10] sm:$0xff] }
  0xfd   : > { %1169 = vmatpush3.bf16.msra.mxu1 %v560_v10  ;;  %v596_v13 = vadd.bf16 %v1242_v12, %v560_v10  ;;  %v597_v17 = vadd.bf16 %v1243_v14, %v561_v15  ;;  %v563_v21 = vld [vmem:[#allocation2 + $0x18] sm:$0xff]  ;;  %v598_v22 = vadd.bf16 %v1244_v20, %v562_v18  ;;  %v738_v10 = vld [vmem:[%s1543_s6] sm:$0x3]  ;;  %v746_v12 = vsub.s32 1, %v741_v8 }
  0xfe   : > { %1170 = vmatprep.subr.bf16.mxu1 %v1312_v11  ;;  %v599_v29 = vadd.bf16 %v1245_v24, %v563_v21 }
  0xff   : > { %v613_v16 = vsel %vm553_vm2, %v596_v13, 0  ;;  %v616_v19 = vsel %vm553_vm2, %v597_v17, 0  ;;  %v619_v23 = vsel %vm553_vm2, %v598_v22, 0  ;;  %v743_v13 = vrot.slane %v738_v10, %v742_v9 }
 0x100   : > { %1157 = vmatpush3.bf16.xpose.msra.mxu0 %v613_v16  ;;  %v622_v32 = vsel %vm553_vm2, %v599_v29, 0  ;;  %v747_v14 = vrot.slane %v738_v10, %v746_v12 }
 0x101   : > { %1171 = vmatpush3.bf16.msra.mxu1 %v561_v15  ;;  %1158 = vmatprep.subr.bf16.mxu0 %v1312_v11 }
 0x102   : > { %1172 = vmatprep.subr.bf16.mxu1 %v1312_v11 }
 0x105   : > { %1173 = vmatpush3.bf16.msra.mxu1 %v562_v18 }
 0x106   : > { %1174 = vmatprep.subr.bf16.mxu1 %v1312_v11 }
 0x108   : > { %1159 = vmatpush3.bf16.xpose.msra.mxu0 %v616_v19 }
 0x109   : > { %1175 = vmatpush3.bf16.msra.mxu1 %v563_v21  ;;  %1160 = vmatprep.subr.bf16.mxu0 %v1312_v11 }
 0x10a   : > { %773 = vmatprep.subr.bf16.mxu1 %v1248_v52 }
 0x110   : > { %1161 = vmatpush3.bf16.xpose.msra.mxu0 %v619_v23 }
 0x111   : > { %1162 = vmatprep.subr.bf16.mxu0 %v1312_v11 }
 0x118   : > { %1163 = vmatpush3.bf16.xpose.msra.mxu0 %v622_v32 }
 0x119   : > { %1188 = vmatprep.subr.bf16.mxu0 %v1312_v11 }
 0x11f   : > { %1165 = vmatmul.mubr.msk.bf16.vlgmr.msra.gmra.mrb[0].mxu0 %vm553_vm2, %v608_v35 }
 0x120   : > { %1192 = vmatprep.mubr.msk.bf16.mxu0 %vm1313_vm3, %v1312_v11  ;;  %1189 = vmatpush3.bf16.msra.mxu0 %v1254_v26 }
 0x121   : > { %1190 = vmatprep.subr.bf16.mxu0 %v1312_v11 }
 0x124   : > { %1191 = vmatpush3.bf16.msra.mxu0 %v1255_v27 }
 0x1f2   : > { %v658_v36 = vpop.f32.mrb[0].mxu0 }
 0x1f3   : > { %v1166_v37 = vpop.f32.mrb[1].mxu0  ;;  %v666_v38 = vsel %vm665_vm4, %v658_v36, -inf }
 0x1f4   : > { %667 = vmax.xlane.f32.xlu0 %v666_v38  ;;  %v661_v39 = vpop.f32.mrb[2].mxu0 }
 0x1f5   : > { %v1167_v40 = vpop.f32.mrb[3].mxu0  ;;  %v669_v41 = vsel %vm665_vm4, %v661_v39, -inf }
 0x1f8   : > { %670 = vmax.xlane.f32.xlu0 %v669_v41 }
 0x281   : > { %v668_v42 = vpop.xlane.xlu0 %667 }
 0x282   : > { %v672_v43 = vsub.f32 %v658_v36, %v668_v42 }
 0x284   : > { %v674_v44 = vmul.f32 1.442695, %v672_v43 }
 0x285   : > { %v671_v45 = vpop.xlane.xlu0 %670 }
 0x286   : > { %1256 = vpow2.f32 %v674_v44  ;;  %v673_v46 = vsub.f32 %v661_v39, %v671_v45 }
 0x288   : > { %v676_v47 = vmul.f32 1.442695, %v673_v46 }
 0x28a   : > { %1258 = vpow2.f32 %v676_v47 }
 0x290   : > { %v1257_v48 = vpop.eup %1256 }
 0x291   : > { %v678_v49 = vsel %vm665_vm4, %v1257_v48, 0.0 }
 0x292   : > { %679 = vadd.xlane.f32.xlu1 %v678_v49 }
 0x294   : > { %v1259_v50 = vpop.eup %1258 }
 0x295   : > { %v681_v51 = vsel %vm665_vm4, %v1259_v50, 0.0 }
 0x296   : > { %682 = vadd.xlane.f32.xlu1 %v681_v51 }
 0x31f   : > { %v680_v53 = vpop.xlane.xlu1 %679 }
 0x320   : > { %1260 = vrcp.f32 %v680_v53 }
 0x323   : > { %v683_v54 = vpop.xlane.xlu1 %682 }
 0x324   : > { %1262 = vrcp.f32 %v683_v54 }
 0x32a   : > { %v1261_v55 = vpop.eup %1260 }
 0x32b   : > { %v686_v57 = vmul.f32 %v1261_v55, %v1257_v48 }
 0x32e   : > { %v1263_v56 = vpop.eup %1262 }
 0x32f   : > { %v687_v58 = vmul.f32 %v1263_v56, %v1259_v50 }
 0x331   : > { %v688_v60 = vpack.c.bf16 %v687_v58, %v686_v57 }
 0x333   : > { %1177 = vmatmul.mubr.msk.bf16.vlgmr.msra.gmra.mrb[0].mxu1 %vm665_vm4, %v688_v60 }
 0x334   : > { %774 = vmatpush1.bf16.msra.mxu1 %v1246_v59  ;;  %805 = vmatprep.mubr.bf16.mxu1 %v1314_v63 }
 0x335   : > { %775 = vmatprep.subr.bf16.mxu1 %v1251_v61 }
 0x338   : > { %776 = vmatpush1.bf16.msra.mxu1 %v1249_v62 }
 0x339   : > { %1180 = vmatprep.subr.bf16.mxu1 %v1312_v11 }
 0x406   : > { %v726_v0 = vpop.f32.mrb[0].mxu1 }
 0x407   : > { %v1178_v1 = vpop.f32.mrb[1].mxu1 }
 0x408   : > { %v729_v2 = vpop.f32.mrb[2].mxu1 }
 0x409   : > { %v733_v3 = vpack.c.bf16 %v729_v2, %v726_v0  ;;  %v1179_v4 = vpop.f32.mrb[3].mxu1 }
 0x40b   : > { %1114 = vmatmul.mubr.msk.bf16.vlgmr.msra.gmra.mrb[4].mxu1 %vm553_vm2, %v733_v3 }
 0x40c   : > { %1184 = vmatprep.mubr.msk.bf16.mxu1 %vm1313_vm3, %v1312_v11  ;;  %1181 = vmatpush3.bf16.msra.mxu1 %v1252_v5 }
 0x40d   : > { %1182 = vmatprep.subr.bf16.mxu1 %v1312_v11  ;;  %v1119_v11 = vld [vmem:[%s1547_s10] ss:$0 sm:$0xff] }
 0x410   : > { %1183 = vmatpush3.bf16.msra.mxu1 %v1253_v6 }
 0x4de   : > { %v807_v15 = vpop.f32.mrb[4].mxu1 }
 0x4df   : > { %v808_v16 = vadd.f32 %v807_v15, %v743_v13  ;;  %v809_v17 = vpop.f32.mrb[5].mxu1 }
 0x4e0   : > { %v810_v18 = vadd.f32 %v809_v17, %v747_v14  ;;  %v811_v19 = vpop.f32.mrb[6].mxu1 }
 0x4e1   : > { %968 = vst [vmem:[%s1434_s29] sm:$0xff] %v808_v16  ;;  %v812_v20 = vadd.f32 %v811_v19, %v743_v13  ;;  %v813_v21 = vpop.f32.mrb[7].mxu1 }
 0x4e2   : > { %v814_v22 = vadd.f32 %v813_v21, %v747_v14  ;;  %v816_v23 = vmax.f32 %v810_v18, 0.0 }
 0x4e3   : > { %969 = vst [vmem:[%s1434_s29 + $0x10] sm:$0xff] %v812_v20 }
 0x4e4   : > { %v817_v24 = vmax.f32 %v814_v22, 0.0 }
 0x4e6   : > { %v818_v25 = vpack.c.bf16 %v817_v24, %v816_v23 }
 0x4e8   : > { %1185 = vmatmul.mubr.msk.bf16.vlgmr.msra.gmra.mrb[8].mxu1 %vm553_vm2, %v818_v25 }
 0x5bb   : > { %v879_v29 = vpop.f32.mrb[8].mxu1 }
 0x5bc   : > { %v880_v30 = vadd.f32 %v1115_v28, %v879_v29  ;;  %v1186_v31 = vpop.f32.mrb[9].mxu1 }
 0x5bd   : > { %v882_v32 = vpop.f32.mrb[10].mxu1 }
 0x5be   : > { %v883_v33 = vadd.f32 %v1115_v28, %v882_v32  ;;  %v1187_v34 = vpop.f32.mrb[11].mxu1  ;;  %v886_v35 = vmax.f32 %v880_v30, 0.0 }
 0x5c0   : > { %v887_v36 = vmax.f32 %v883_v33, 0.0 }
 0x5c2   : > { %v888_v37 = vpack.c.bf16 %v887_v36, %v886_v35 }
 0x5c4   : > { %1193 = vmatmul.mubr.msk.bf16.vlgmr.msra.gmra.mrb[4].mxu0 %vm553_vm2, %v888_v37 }
 0x697   : > { %v949_v38 = vpop.f32.mrb[4].mxu0 }
 0x698   : > { %v950_v39 = vadd.f32 %v1119_v11, %v949_v38  ;;  %v1194_v40 = vpop.f32.mrb[5].mxu0 }
 0x699   : > { %v952_v41 = vpop.f32.mrb[6].mxu0 }
 0x69a   : > { %v1123_v42 = vmul.f32 -1.442695, %v950_v39  ;;  %v953_v43 = vadd.f32 %v1119_v11, %v952_v41  ;;  %v1195_v44 = vpop.f32.mrb[7].mxu0 }
 0x69c   : > { %1264 = vpow2.f32 %v1123_v42  ;;  %v1124_v45 = vmul.f32 -1.442695, %v953_v43 }
 0x69e   : > { %1266 = vpow2.f32 %v1124_v45 }
 0x6a6   : > { %v1265_v46 = vpop.eup %1264 }
 0x6a7   : > { %v962_v47 = vadd.f32 1.0, %v1265_v46 }
 0x6a8   : > { %v1267_v48 = vpop.eup %1266 }
 0x6a9   : > { %1268 = vrcp.f32 %v962_v47  ;;  %v963_v49 = vadd.f32 1.0, %v1267_v48 }
 0x6ab   : > { %1270 = vrcp.f32 %v963_v49 }
 0x6b3   : > { %v1269_v50 = vpop.eup %1268 }
 0x6b4   : > { %970 = vst [vmem:[%s1434_s29 + $0x8] sm:$0xff] %v1269_v50 }
 0x6b5   : > { %v1271_v51 = vpop.eup %1270 }
 0x6b6   : > { %971 = vst [vmem:[%s1434_s29 + $0x18] sm:$0xff] %v1271_v51 }
 0x6b7 PF: > { %s1557_s14 = sld [smem:[#allocation5_spill]]  ;;  %s1558_s17 = sld [smem:[#allocation3_spill]] }
 0x6b8   : > { %s1559_s18 = sld [smem:[#allocation4_spill]]  ;;  %s1560_s19 = sld [smem:[#allocation6_spill]] }
 0x6b9   : > { %s1561_s20 = sld [smem:[#allocation7_spill]] }
 0x6bd   : > { %s21_s21 = sadd.s32 1, %s1557_s14  }
 0x6be   : > { %p18_p8 = scmp.ge.s32.totalorder %s21_s21, 6  }
 0x6c0   :  { %20 = sbr.rel (!%p18_p8) target bundleno = 3 (0x3), region = 108 }

</bundles_post_ra>
